<compile_context>
chip_gen: v6e
topology: v6e:2x2x1
jax: 0.10.0
libtpu: 0.0.40
codegen_flags: <defaults>
</compile_context>

<pallas_src>
import functools
import math

import jax
import jax.numpy as jnp
from jax.experimental import pallas as pl
from jax.experimental.pallas import tpu as pltpu

LOG2PI = math.log(2.0 * math.pi)
HIDDEN = 64
FUSED_H = 2 * HIDDEN  # 128: actor|critic hidden fused into one lane-dense vector


def _round_up(x, m):
    return (x + m - 1) // m * m


def _bf16_elementwise_default():
    """bf16 tanh only where the EUP/VPU supports it (v6e / v7x); f32 on v5 and older."""
    try:
        kind = jax.devices()[0].device_kind.lower()
    except Exception:
        return False
    return not any(tag in kind for tag in ("v2", "v3", "v4", "v5"))


def actor_critic_kernel(state_ref, action_ref, w1_ref, w2_ref, w3_ref, b_ref,
                        out_ref, *, action_dim, bf16_tanh):
    """One batch tile: fused actor+critic MLPs + diag-Gaussian quadratic form.

    out lanes: [0:A) = action_mean, A = state_value,
               A+1   = -0.5 * (a-mean)^T diag(exp(-log_std)) (a-mean),
               rest  = 0.  (wrapper adds the batch-independent log-prob constant)
    """
    A = action_dim
    out_w = out_ref.shape[-1]
    mxu_dtype = w1_ref.dtype

    x = state_ref[...].astype(mxu_dtype)                  # in-kernel f32 -> bf16 cast
    b1 = b_ref[0:1, :]                                    # [1, 128] f32
    b2 = b_ref[1:2, :]
    b3 = b_ref[2:3, :out_w]                               # [1, OUT_W]
    inv_var = b_ref[3:4, :A]                              # [1, A] = exp(-log_std)

    def act(pre):
        if bf16_tanh:
            return jnp.tanh(pre.astype(mxu_dtype))        # bf16 EUP (v6e / v7x)
        return jnp.tanh(pre).astype(mxu_dtype)            # f32 EUP (v5e-safe)

    # Fused layers 1 & 2: actor | critic side-by-side in 128 lanes (full vreg width).
    h = act(jnp.dot(x, w1_ref[...], preferred_element_type=jnp.float32) + b1)
    h = act(jnp.dot(h, w2_ref[...], preferred_element_type=jnp.float32) + b2)
    # Fused layer 3: lanes [0:A) = actor mean, lane A = critic value, rest 0.
    y = jnp.dot(h, w3_ref[...], preferred_element_type=jnp.float32) + b3  # [TB, OUT_W]

    # Diagonal-Gaussian quadratic form (exp(-log_std) multiply, no vector divide).
    diff = action_ref[...] - y[:, :A]                     # [TB, A] f32
    quad = jnp.sum(diff * diff * inv_var, axis=-1, keepdims=True)  # [TB, 1]

    lane = jax.lax.broadcasted_iota(jnp.int32, y.shape, 1)
    out_ref[...] = jnp.where(lane == A + 1, -0.5 * quad, y)


def init_params(key, state_dim, action_dim, hidden=HIDDEN):
    """PyTorch-style Linear init: U(-1/sqrt(fan_in), 1/sqrt(fan_in)); actor_std = 0."""
    def linear(key, fan_in, fan_out):
        kw, kb = jax.random.split(key)
        bound = 1.0 / math.sqrt(fan_in)
        w = jax.random.uniform(kw, (fan_in, fan_out), jnp.float32, -bound, bound)
        b = jax.random.uniform(kb, (1, fan_out), jnp.float32, -bound, bound)
        return w, b

    keys = jax.random.split(key, 6)
    aw1, ab1 = linear(keys[0], state_dim, hidden)
    aw2, ab2 = linear(keys[1], hidden, hidden)
    aw3, ab3 = linear(keys[2], hidden, action_dim)
    cw1, cb1 = linear(keys[3], state_dim, hidden)
    cw2, cb2 = linear(keys[4], hidden, hidden)
    cw3, cb3 = linear(keys[5], hidden, 1)
    log_std = jnp.zeros((1, action_dim), jnp.float32)     # nn.Parameter(zeros)
    return (aw1, ab1, aw2, ab2, aw3, ab3,
            cw1, cb1, cw2, cb2, cw3, cb3, log_std)


def pack_params(params, *, out_w, mxu_dtype=jnp.bfloat16):
    """Pack 13 parameter tensors into 3 lane-dense weight slabs + 1 bias/aux slab.

    Tiny (<100 KiB) and fused into the jit graph; hoist it out of the training
    loop if params are reused across many evaluate() calls.
    """
    (aw1, ab1, aw2, ab2, aw3, ab3,
     cw1, cb1, cw2, cb2, cw3, cb3, log_std) = params
    hidden = aw2.shape[0]
    A = aw3.shape[1]
    H2 = 2 * hidden
    assert A + 2 <= out_w <= H2

    w1 = jnp.concatenate([aw1, cw1], axis=1)                        # [S, 128]
    w2 = jnp.zeros((H2, H2), jnp.float32)                           # blockdiag
    w2 = w2.at[:hidden, :hidden].set(aw2)
    w2 = w2.at[hidden:, hidden:].set(cw2)
    w3 = jnp.zeros((H2, out_w), jnp.float32)
    w3 = w3.at[:hidden, :A].set(aw3)
    w3 = w3.at[hidden:, A:A + 1].set(cw3)

    b = jnp.zeros((8, H2), jnp.float32)
    b = b.at[0, :].set(jnp.concatenate([ab1, cb1], axis=1)[0])
    b = b.at[1, :].set(jnp.concatenate([ab2, cb2], axis=1)[0])
    b = b.at[2, :A].set(ab3[0])
    b = b.at[2, A].set(cb3[0, 0])
    b = b.at[3, :A].set(jnp.exp(-log_std[0]))                       # 1 / variance

    return (w1.astype(mxu_dtype), w2.astype(mxu_dtype),
            w3.astype(mxu_dtype), b)


@functools.partial(jax.jit, static_argnames=("block_b", "bf16_tanh"))
def evaluate(state, action, params, *, block_b=2048, bf16_tanh=None):
    """ActorCritic.evaluate(state, action) -> (log_probs [B], values [B,1], entropy [B])."""
    B, S = state.shape
    A = action.shape[1]
    log_std = params[-1]
    hidden = params[2].shape[0]
    H2 = 2 * hidden
    OUT_W = max(8, _round_up(A + 2, 8))

    if bf16_tanh is None:
        bf16_tanh = _bf16_elementwise_default()

    w1, w2, w3, b = pack_params(params, out_w=OUT_W)

    # No wrapper-side pad / cast / slice passes: Pallas handles the ragged last
    # batch block (garbage rows masked on write and never consumed).
    TB = min(_round_up(B, 8), _round_up(block_b, 8))

    kernel = functools.partial(actor_critic_kernel, action_dim=A,
                               bf16_tanh=bf16_tanh)
    out = pl.pallas_call(
        kernel,
        out_shape=jax.ShapeDtypeStruct((B, OUT_W), jnp.float32),
        grid=(pl.cdiv(B, TB),),
        in_specs=[
            pl.BlockSpec((TB, S), lambda i: (i, 0)),        # state tile (pipelined)
            pl.BlockSpec((TB, A), lambda i: (i, 0)),        # action tile (pipelined)
            pl.BlockSpec((S, H2), lambda i: (0, 0)),        # fused W1 (VMEM-resident)
            pl.BlockSpec((H2, H2), lambda i: (0, 0)),       # fused W2
            pl.BlockSpec((H2, OUT_W), lambda i: (0, 0)),    # fused W3
            pl.BlockSpec((8, H2), lambda i: (0, 0)),        # bias / inv_var slab
        ],
        out_specs=pl.BlockSpec((TB, OUT_W), lambda i: (i, 0)),
        compiler_params=pltpu.CompilerParams(
            # "parallel" shards the batch axis across v7x's 2 TensorCores.
            # TODO(synk): trace-check on v7x; switch to pltpu.CORE_PARALLEL if not.
            dimension_semantics=("parallel",),
            vmem_limit_bytes=32 * 1024 * 1024,              # safe within v7x's 64 MiB
        ),
    )(state, action, w1, w2, w3, b)

    # Narrow lane slices + batch-independent Gaussian constants fuse under jit.
    values = out[:, A:A + 1]
    logdet = jnp.sum(log_std)
    log_probs = out[:, A + 1] - 0.5 * (A * LOG2PI + logdet)
    entropy = jnp.full((B,), 0.5 * A * (1.0 + LOG2PI) + 0.5 * logdet, jnp.float32)
    return log_probs, values, entropy


def evaluate_ref(state, action, params):
    """Pure-JAX reference with the same bf16-in / f32-accumulate matmul contract."""
    (aw1, ab1, aw2, ab2, aw3, ab3,
     cw1, cb1, cw2, cb2, cw3, cb3, log_std) = params

    def mm(x, w):
        return jnp.dot(x.astype(jnp.bfloat16), w.astype(jnp.bfloat16),
                       preferred_element_type=jnp.float32)

    h = jnp.tanh(mm(state, aw1) + ab1)
    h = jnp.tanh(mm(h, aw2) + ab2)
    mean = mm(h, aw3) + ab3
    hc = jnp.tanh(mm(state, cw1) + cb1)
    hc = jnp.tanh(mm(hc, cw2) + cb2)
    values = mm(hc, cw3) + cb3

    A = log_std.shape[-1]
    inv_var = jnp.exp(-log_std)          # covariance = diag(exp(log_std))
    logdet = jnp.sum(log_std)
    diff = action - mean
    quad = jnp.sum(diff * diff * inv_var, axis=-1)
    log_probs = -0.5 * (quad + A * LOG2PI + logdet)
    entropy = jnp.full((state.shape[0],),
                       0.5 * A * (1.0 + LOG2PI) + 0.5 * logdet, jnp.float32)
    return log_probs, values, entropy


if __name__ == "__main__":
    # B=37 with block_b=8 exercises 5 pipelined grid steps including a ragged
    # (masked) last batch block; STATE_DIM/ACTION_DIM mirror a small PPO env.
    B, STATE_DIM, ACTION_DIM = 37, 16, 4

    key = jax.random.PRNGKey(0)
    k_params, k_state, k_action, k_std = jax.random.split(key, 4)

    params = list(init_params(k_params, STATE_DIM, ACTION_DIM))
    # Non-zero actor_std so the inv-variance / log-det paths are actually exercised.
    params[-1] = 0.3 * jax.random.normal(k_std, (1, ACTION_DIM), jnp.float32)
    params = tuple(params)

    state = jax.random.normal(k_state, (B, STATE_DIM), jnp.float32)
    action = jnp.clip(jax.random.normal(k_action, (B, ACTION_DIM), jnp.float32),
                      -1.0, 1.0)

    try:
        lp, val, ent = evaluate(state, action, params, block_b=8)
        jax.block_until_ready((lp, val, ent))
    except Exception:
        # Defensive fallback: keep the f32 tanh path if bf16 tanh fails to lower
        # on this chip generation.
        lp, val, ent = evaluate(state, action, params, block_b=8, bf16_tanh=False)
        jax.block_until_ready((lp, val, ent))

    lp_r, val_r, ent_r = evaluate_ref(state, action, params)
    assert lp.shape == (B,) and val.shape == (B, 1) and ent.shape == (B,)
    # Tolerances cover the bf16 MXU contract plus the bf16-tanh rounding-point
    # difference on v6e/v7x; structural bugs give O(1) errors.
    assert jnp.allclose(val, val_r, atol=2e-2, rtol=2e-2)
    assert jnp.allclose(lp, lp_r, atol=2e-2, rtol=2e-2)
    assert jnp.allclose(ent, ent_r, atol=1e-5, rtol=1e-5)

    print("KERNEL_OK")
</pallas_src>

<mosaic_0001>
module attributes {stable_mosaic.version = 11 : i64} {
  func.func @actor_critic_kernel(%arg0: i32, %arg1: memref<8x16xf32, #tpu.memory_space<vmem>>, %arg2: memref<8x4xf32, #tpu.memory_space<vmem>>, %arg3: memref<16x128xbf16, #tpu.memory_space<vmem>>, %arg4: memref<128x128xbf16, #tpu.memory_space<vmem>>, %arg5: memref<128x8xbf16, #tpu.memory_space<vmem>>, %arg6: memref<8x128xf32, #tpu.memory_space<vmem>>, %arg7: memref<8x8xf32, #tpu.memory_space<vmem>>) attributes {dimension_semantics = [#tpu.dimension_semantics<parallel>], iteration_bounds = array<i64: 5>, scalar_prefetch = 0 : i64, scratch_operands = 0 : i64, tpu.core_type = #tpu.core_type<tc>, window_params = [{transform_indices = @transform_0, window_bounds = array<i64: 8, 16>}, {transform_indices = @transform_1, window_bounds = array<i64: 8, 4>}, {pipeline_mode = #tpu.pipeline_mode<synchronous>, transform_indices = @transform_2, window_bounds = array<i64: 16, 128>}, {pipeline_mode = #tpu.pipeline_mode<synchronous>, transform_indices = @transform_3, window_bounds = array<i64: 128, 128>}, {pipeline_mode = #tpu.pipeline_mode<synchronous>, transform_indices = @transform_4, window_bounds = array<i64: 128, 8>}, {pipeline_mode = #tpu.pipeline_mode<synchronous>, transform_indices = @transform_5, window_bounds = array<i64: 8, 128>}, {transform_indices = @transform_6, window_bounds = array<i64: 8, 8>}]} {
    %c0 = arith.constant 0 : index
    %c0_0 = arith.constant 0 : index
    %0 = vector.load %arg1[%c0, %c0_0] : memref<8x16xf32, #tpu.memory_space<vmem>>, vector<8x16xf32>
    %1 = arith.truncf %0 : vector<8x16xf32> to vector<8x16xbf16>
    %c0_1 = arith.constant 0 : index
    %c0_2 = arith.constant 0 : index
    %2 = vector.load %arg6[%c0_1, %c0_2] : memref<8x128xf32, #tpu.memory_space<vmem>>, vector<1x128xf32>
    %c1 = arith.constant 1 : index
    %c0_3 = arith.constant 0 : index
    %3 = vector.load %arg6[%c1, %c0_3] : memref<8x128xf32, #tpu.memory_space<vmem>>, vector<1x128xf32>
    %c2 = arith.constant 2 : index
    %c0_4 = arith.constant 0 : index
    %4 = vector.load %arg6[%c2, %c0_4] : memref<8x128xf32, #tpu.memory_space<vmem>>, vector<1x8xf32>
    %c3 = arith.constant 3 : index
    %c0_5 = arith.constant 0 : index
    %5 = vector.load %arg6[%c3, %c0_5] : memref<8x128xf32, #tpu.memory_space<vmem>>, vector<1x4xf32>
    %c0_6 = arith.constant 0 : index
    %c0_7 = arith.constant 0 : index
    %6 = vector.load %arg3[%c0_6, %c0_7] : memref<16x128xbf16, #tpu.memory_space<vmem>>, vector<16x128xbf16>
    %cst = arith.constant dense<0.000000e+00> : vector<8x128xf32>
    %7 = tpu.matmul %1, %6, %cst {dimension_numbers = #tpu.dot_dimension_numbers<[1], [0], [0], [1], [0, 0, 1, 1], [], []>} : vector<8x16xbf16>, vector<16x128xbf16>, vector<8x128xf32> -> vector<8x128xf32>
    %8 = vector.broadcast %2 : vector<1x128xf32> to vector<8x128xf32>
    %9 = arith.addf %7, %8 : vector<8x128xf32>
    %10 = arith.truncf %9 : vector<8x128xf32> to vector<8x128xbf16>
    %11 = math.tanh %10 : vector<8x128xbf16>
    %c0_8 = arith.constant 0 : index
    %c0_9 = arith.constant 0 : index
    %12 = vector.load %arg4[%c0_8, %c0_9] : memref<128x128xbf16, #tpu.memory_space<vmem>>, vector<128x128xbf16>
    %cst_10 = arith.constant dense<0.000000e+00> : vector<8x128xf32>
    %13 = tpu.matmul %11, %12, %cst_10 {dimension_numbers = #tpu.dot_dimension_numbers<[1], [0], [0], [1], [0, 0, 1, 1], [], []>} : vector<8x128xbf16>, vector<128x128xbf16>, vector<8x128xf32> -> vector<8x128xf32>
    %14 = vector.broadcast %3 : vector<1x128xf32> to vector<8x128xf32>
    %15 = arith.addf %13, %14 : vector<8x128xf32>
    %16 = arith.truncf %15 : vector<8x128xf32> to vector<8x128xbf16>
    %17 = math.tanh %16 : vector<8x128xbf16>
    %c0_11 = arith.constant 0 : index
    %c0_12 = arith.constant 0 : index
    %18 = vector.load %arg5[%c0_11, %c0_12] : memref<128x8xbf16, #tpu.memory_space<vmem>>, vector<128x8xbf16>
    %cst_13 = arith.constant dense<0.000000e+00> : vector<8x8xf32>
    %19 = tpu.matmul %17, %18, %cst_13 {dimension_numbers = #tpu.dot_dimension_numbers<[1], [0], [0], [1], [0, 0, 1, 1], [], []>} : vector<8x128xbf16>, vector<128x8xbf16>, vector<8x8xf32> -> vector<8x8xf32>
    %20 = vector.broadcast %4 : vector<1x8xf32> to vector<8x8xf32>
    %21 = arith.addf %19, %20 : vector<8x8xf32>
    %c0_14 = arith.constant 0 : index
    %c0_15 = arith.constant 0 : index
    %22 = vector.load %arg2[%c0_14, %c0_15] : memref<8x4xf32, #tpu.memory_space<vmem>>, vector<8x4xf32>
    %23 = vector.extract_strided_slice %21 {offsets = [0, 0], sizes = [8, 4], strides = [1, 1]} : vector<8x8xf32> to vector<8x4xf32>
    %24 = arith.subf %22, %23 : vector<8x4xf32>
    %25 = arith.mulf %24, %24 : vector<8x4xf32>
    %26 = vector.broadcast %5 : vector<1x4xf32> to vector<8x4xf32>
    %27 = arith.mulf %25, %26 : vector<8x4xf32>
    %cst_16 = arith.constant dense<0.000000e+00> : vector<8xf32>
    %28 = vector.multi_reduction <add>, %27, %cst_16 [1] : vector<8x4xf32> to vector<8xf32>
    %29 = vector.shape_cast %28 : vector<8xf32> to vector<8x1xf32>
    %30 = tpu.iota {dimensions = array<i32: 1>} : vector<8x8xi32>
    %c5_i32 = arith.constant 5 : i32
    %31 = vector.broadcast %c5_i32 : i32 to vector<8x8xi32>
    %32 = arith.cmpi eq, %30, %31 : vector<8x8xi32>
    %cst_17 = arith.constant -5.000000e-01 : f32
    %33 = vector.broadcast %cst_17 : f32 to vector<8x1xf32>
    %34 = arith.mulf %33, %29 : vector<8x1xf32>
    %35 = vector.shape_cast %34 : vector<8x1xf32> to vector<8x1xf32>
    %36 = vector.broadcast %35 : vector<8x1xf32> to vector<8x8xf32>
    %37 = arith.select %32, %36, %21 : vector<8x8xi1>, vector<8x8xf32>
    %c0_18 = arith.constant 0 : index
    %c0_19 = arith.constant 0 : index
    %38 = vector.load %arg7[%c0_18, %c0_19] : memref<8x8xf32, #tpu.memory_space<vmem>>, vector<8x8xf32>
    tpu.vector_store %arg7[%c0_18, %c0_19], %37 {strides = array<i32>} : memref<8x8xf32, #tpu.memory_space<vmem>>, vector<8x8xf32>,
    return
  }
  func.func @transform_0(%arg0: i32) -> (i32, i32) {
    %c0_i32 = arith.constant 0 : i32
    %c0_i32_0 = arith.constant 0 : i32
    return %arg0, %c0_i32 : i32, i32
  }
  func.func @transform_1(%arg0: i32) -> (i32, i32) {
    %c0_i32 = arith.constant 0 : i32
    %c0_i32_0 = arith.constant 0 : i32
    return %arg0, %c0_i32 : i32, i32
  }
  func.func @transform_2(%arg0: i32) -> (i32, i32) {
    %c0_i32 = arith.constant 0 : i32
    %c0_i32_0 = arith.constant 0 : i32
    %c0_i32_1 = arith.constant 0 : i32
    return %c0_i32, %c0_i32_0 : i32, i32
  }
  func.func @transform_3(%arg0: i32) -> (i32, i32) {
    %c0_i32 = arith.constant 0 : i32
    %c0_i32_0 = arith.constant 0 : i32
    %c0_i32_1 = arith.constant 0 : i32
    return %c0_i32, %c0_i32_0 : i32, i32
  }
  func.func @transform_4(%arg0: i32) -> (i32, i32) {
    %c0_i32 = arith.constant 0 : i32
    %c0_i32_0 = arith.constant 0 : i32
    %c0_i32_1 = arith.constant 0 : i32
    return %c0_i32, %c0_i32_0 : i32, i32
  }
  func.func @transform_5(%arg0: i32) -> (i32, i32) {
    %c0_i32 = arith.constant 0 : i32
    %c0_i32_0 = arith.constant 0 : i32
    %c0_i32_1 = arith.constant 0 : i32
    return %c0_i32, %c0_i32_0 : i32, i32
  }
  func.func @transform_6(%arg0: i32) -> (i32, i32) {
    %c0_i32 = arith.constant 0 : i32
    %c0_i32_0 = arith.constant 0 : i32
    return %arg0, %c0_i32 : i32, i32
  }
}

module attributes {stable_mosaic.version = 11 : i64} {
  func.func @actor_critic_kernel(%arg0: i32, %arg1: memref<8x16xf32, #tpu.memory_space<vmem>>, %arg2: memref<8x4xf32, #tpu.memory_space<vmem>>, %arg3: memref<16x128xbf16, #tpu.memory_space<vmem>>, %arg4: memref<128x128xbf16, #tpu.memory_space<vmem>>, %arg5: memref<128x8xbf16, #tpu.memory_space<vmem>>, %arg6: memref<8x128xf32, #tpu.memory_space<vmem>>, %arg7: memref<8x8xf32, #tpu.memory_space<vmem>>) attributes {dimension_semantics = [#tpu.dimension_semantics<parallel>], iteration_bounds = array<i64: 5>, scalar_prefetch = 0 : i64, scratch_operands = 0 : i64, tpu.core_type = #tpu.core_type<tc>, window_params = [{transform_indices = @transform_0, window_bounds = array<i64: 8, 16>}, {transform_indices = @transform_1, window_bounds = array<i64: 8, 4>}, {pipeline_mode = #tpu.pipeline_mode<synchronous>, transform_indices = @transform_2, window_bounds = array<i64: 16, 128>}, {pipeline_mode = #tpu.pipeline_mode<synchronous>, transform_indices = @transform_3, window_bounds = array<i64: 128, 128>}, {pipeline_mode = #tpu.pipeline_mode<synchronous>, transform_indices = @transform_4, window_bounds = array<i64: 128, 8>}, {pipeline_mode = #tpu.pipeline_mode<synchronous>, transform_indices = @transform_5, window_bounds = array<i64: 8, 128>}, {transform_indices = @transform_6, window_bounds = array<i64: 8, 8>}]} {
    %c0 = arith.constant 0 : index
    %c0_0 = arith.constant 0 : index
    %0 = vector.load %arg1[%c0, %c0_0] : memref<8x16xf32, #tpu.memory_space<vmem>>, vector<8x16xf32>
    %1 = arith.truncf %0 : vector<8x16xf32> to vector<8x16xbf16>
    %c0_1 = arith.constant 0 : index
    %c0_2 = arith.constant 0 : index
    %2 = vector.load %arg6[%c0_1, %c0_2] : memref<8x128xf32, #tpu.memory_space<vmem>>, vector<1x128xf32>
    %c1 = arith.constant 1 : index
    %c0_3 = arith.constant 0 : index
    %3 = vector.load %arg6[%c1, %c0_3] : memref<8x128xf32, #tpu.memory_space<vmem>>, vector<1x128xf32>
    %c2 = arith.constant 2 : index
    %c0_4 = arith.constant 0 : index
    %4 = vector.load %arg6[%c2, %c0_4] : memref<8x128xf32, #tpu.memory_space<vmem>>, vector<1x8xf32>
    %c3 = arith.constant 3 : index
    %c0_5 = arith.constant 0 : index
    %5 = vector.load %arg6[%c3, %c0_5] : memref<8x128xf32, #tpu.memory_space<vmem>>, vector<1x4xf32>
    %c0_6 = arith.constant 0 : index
    %c0_7 = arith.constant 0 : index
    %6 = vector.load %arg3[%c0_6, %c0_7] : memref<16x128xbf16, #tpu.memory_space<vmem>>, vector<16x128xbf16>
    %cst = arith.constant dense<0.000000e+00> : vector<8x128xf32>
    %7 = tpu.matmul %1, %6, %cst {dimension_numbers = #tpu.dot_dimension_numbers<[1], [0], [0], [1], [0, 0, 1, 1], [], []>} : vector<8x16xbf16>, vector<16x128xbf16>, vector<8x128xf32> -> vector<8x128xf32>
    %8 = vector.broadcast %2 : vector<1x128xf32> to vector<8x128xf32>
    %9 = arith.addf %7, %8 : vector<8x128xf32>
    %10 = math.tanh %9 : vector<8x128xf32>
    %11 = arith.truncf %10 : vector<8x128xf32> to vector<8x128xbf16>
    %c0_8 = arith.constant 0 : index
    %c0_9 = arith.constant 0 : index
    %12 = vector.load %arg4[%c0_8, %c0_9] : memref<128x128xbf16, #tpu.memory_space<vmem>>, vector<128x128xbf16>
    %cst_10 = arith.constant dense<0.000000e+00> : vector<8x128xf32>
    %13 = tpu.matmul %11, %12, %cst_10 {dimension_numbers = #tpu.dot_dimension_numbers<[1], [0], [0], [1], [0, 0, 1, 1], [], []>} : vector<8x128xbf16>, vector<128x128xbf16>, vector<8x128xf32> -> vector<8x128xf32>
    %14 = vector.broadcast %3 : vector<1x128xf32> to vector<8x128xf32>
    %15 = arith.addf %13, %14 : vector<8x128xf32>
    %16 = math.tanh %15 : vector<8x128xf32>
    %17 = arith.truncf %16 : vector<8x128xf32> to vector<8x128xbf16>
    %c0_11 = arith.constant 0 : index
    %c0_12 = arith.constant 0 : index
    %18 = vector.load %arg5[%c0_11, %c0_12] : memref<128x8xbf16, #tpu.memory_space<vmem>>, vector<128x8xbf16>
    %cst_13 = arith.constant dense<0.000000e+00> : vector<8x8xf32>
    %19 = tpu.matmul %17, %18, %cst_13 {dimension_numbers = #tpu.dot_dimension_numbers<[1], [0], [0], [1], [0, 0, 1, 1], [], []>} : vector<8x128xbf16>, vector<128x8xbf16>, vector<8x8xf32> -> vector<8x8xf32>
    %20 = vector.broadcast %4 : vector<1x8xf32> to vector<8x8xf32>
    %21 = arith.addf %19, %20 : vector<8x8xf32>
    %c0_14 = arith.constant 0 : index
    %c0_15 = arith.constant 0 : index
    %22 = vector.load %arg2[%c0_14, %c0_15] : memref<8x4xf32, #tpu.memory_space<vmem>>, vector<8x4xf32>
    %23 = vector.extract_strided_slice %21 {offsets = [0, 0], sizes = [8, 4], strides = [1, 1]} : vector<8x8xf32> to vector<8x4xf32>
    %24 = arith.subf %22, %23 : vector<8x4xf32>
    %25 = arith.mulf %24, %24 : vector<8x4xf32>
    %26 = vector.broadcast %5 : vector<1x4xf32> to vector<8x4xf32>
    %27 = arith.mulf %25, %26 : vector<8x4xf32>
    %cst_16 = arith.constant dense<0.000000e+00> : vector<8xf32>
    %28 = vector.multi_reduction <add>, %27, %cst_16 [1] : vector<8x4xf32> to vector<8xf32>
    %29 = vector.shape_cast %28 : vector<8xf32> to vector<8x1xf32>
    %30 = tpu.iota {dimensions = array<i32: 1>} : vector<8x8xi32>
    %c5_i32 = arith.constant 5 : i32
    %31 = vector.broadcast %c5_i32 : i32 to vector<8x8xi32>
    %32 = arith.cmpi eq, %30, %31 : vector<8x8xi32>
    %cst_17 = arith.constant -5.000000e-01 : f32
    %33 = vector.broadcast %cst_17 : f32 to vector<8x1xf32>
    %34 = arith.mulf %33, %29 : vector<8x1xf32>
    %35 = vector.shape_cast %34 : vector<8x1xf32> to vector<8x1xf32>
    %36 = vector.broadcast %35 : vector<8x1xf32> to vector<8x8xf32>
    %37 = arith.select %32, %36, %21 : vector<8x8xi1>, vector<8x8xf32>
    %c0_18 = arith.constant 0 : index
    %c0_19 = arith.constant 0 : index
    %38 = vector.load %arg7[%c0_18, %c0_19] : memref<8x8xf32, #tpu.memory_space<vmem>>, vector<8x8xf32>
    tpu.vector_store %arg7[%c0_18, %c0_19], %37 {strides = array<i32>} : memref<8x8xf32, #tpu.memory_space<vmem>>, vector<8x8xf32>,
    return
  }
  func.func @transform_0(%arg0: i32) -> (i32, i32) {
    %c0_i32 = arith.constant 0 : i32
    %c0_i32_0 = arith.constant 0 : i32
    return %arg0, %c0_i32 : i32, i32
  }
  func.func @transform_1(%arg0: i32) -> (i32, i32) {
    %c0_i32 = arith.constant 0 : i32
    %c0_i32_0 = arith.constant 0 : i32
    return %arg0, %c0_i32 : i32, i32
  }
  func.func @transform_2(%arg0: i32) -> (i32, i32) {
    %c0_i32 = arith.constant 0 : i32
    %c0_i32_0 = arith.constant 0 : i32
    %c0_i32_1 = arith.constant 0 : i32
    return %c0_i32, %c0_i32_0 : i32, i32
  }
  func.func @transform_3(%arg0: i32) -> (i32, i32) {
    %c0_i32 = arith.constant 0 : i32
    %c0_i32_0 = arith.constant 0 : i32
    %c0_i32_1 = arith.constant 0 : i32
    return %c0_i32, %c0_i32_0 : i32, i32
  }
  func.func @transform_4(%arg0: i32) -> (i32, i32) {
    %c0_i32 = arith.constant 0 : i32
    %c0_i32_0 = arith.constant 0 : i32
    %c0_i32_1 = arith.constant 0 : i32
    return %c0_i32, %c0_i32_0 : i32, i32
  }
  func.func @transform_5(%arg0: i32) -> (i32, i32) {
    %c0_i32 = arith.constant 0 : i32
    %c0_i32_0 = arith.constant 0 : i32
    %c0_i32_1 = arith.constant 0 : i32
    return %c0_i32, %c0_i32_0 : i32, i32
  }
  func.func @transform_6(%arg0: i32) -> (i32, i32) {
    %c0_i32 = arith.constant 0 : i32
    %c0_i32_0 = arith.constant 0 : i32
    return %arg0, %c0_i32 : i32, i32
  }
}

</mosaic_0001>

<bundles_post_ra>
// kernel: evaluate.1
= control target key start
LH: loop header
LB: loop body
LE: loop exit
PB: predicated region body
PF: predicated region fallthrough
CT: control target
= control target key end

     0   :  { %s805_s21 = smov 0   ;;  %s916_s0 = inlined_call_operand.vmem [shape: f32[37,16], index: 0, kind: input, shape index: {}]   ;;  %s917_s1 = inlined_call_operand.vmem [shape: f32[37,4], index: 1, kind: input, shape index: {}]   ;;  %s918_s2 = inlined_call_operand.vmem [shape: bf16[16,128], index: 2, kind: input, shape index: {}]   ;;  %s919_s3 = inlined_call_operand.vmem [shape: bf16[128,128], index: 3, kind: input, shape index: {}]   ;;  %s920_s4 = inlined_call_operand.vmem [shape: bf16[128,8], index: 4, kind: input, shape index: {}]   ;;  %s921_s5 = inlined_call_operand.vmem [shape: f32[8,128], index: 5, kind: input, shape index: {}]   ;;  %s922_s6 = inlined_call_operand.vmem [shape: f32[37,8], index: 6, kind: output, shape index: {}]  }
   0x1 LB: > { %s631_s22 = sadd.s32 4294967295, %s766_s21   ;;  %p635_p0 = scmp.ge.s32.totalorder %s766_s21, 1  ;;  %s766_s21 = sphi %s805_s21, %s16_s21  }
   0x2   : > { %p220_p1 = scmp.lt.s32.totalorder %s766_s21, 6 }
   0x4   : > { %p221_p2 = pnand %p635_p0, %p220_p1 }
   0x5   : > { %p252_p3 = scmp.lt.s32.totalorder (!%p221_p2), %s631_s22, 4 }
   0x6   : > { %224 = sbr.rel (%p221_p2) target bundleno = 785 (0x311), region = 44 }
   0xb   : > { %v739_v0 = vld [vmem:[%s918_s2] sm:$0xff]   ;;  %v768_v1 = vmov 0.0   ;;  %v740_v2 = vld [vmem:[%s919_s3 + $0x38] sm:$0xff]   ;;  %vm769_vm0 = vmmov 0   ;;  %s924_s22 = smov (!%p252_p3, %s631_s22), 4  ;;  %v741_v3 = vld [vmem:[%s919_s3 + $0x30] sm:$0xff]   ;;  %v559_v48 = vlaneseq }
   0xc   : > { %683 = vmatprep.subr.bf16.mxu0 %v768_v1  ;;  %689 = vmatprep.subr.bf16.mxu1 %v768_v1  ;;  %s830_s29 = sshll.u32 %s924_s22, 3  ;;  %v742_v4 = vld [vmem:[%s919_s3 + $0x28] sm:$0xff]   ;;  %vm283_vm1 = vcmask 130048   ;;  %v743_v7 = vld [vmem:[%s919_s3 + $0x20] sm:$0xff]   ;;  %v744_v8 = vld [vmem:[%s919_s3 + $0x18] sm:$0xff]   ;;  %vm555_vm2 = vcmask 31744  }
   0xd   : > { %684 = vmatpush3.bf16.msra.mxu0 %v739_v0  ;;  %685 = vmatprep.mubr.msk.bf16.mxu0 %vm769_vm0, %v768_v1  ;;  %s255_s10 = scalar_lea.vmem %s916_s0, %s830_s29  ;;  %v745_v9 = vld [vmem:[%s919_s3 + $0x10] sm:$0xff]   ;;  %v746_v10 = vld [vmem:[%s919_s3 + $0x8] sm:$0xff]   ;;  %v747_v11 = vld [vmem:[%s919_s3] sm:$0xff]   ;;  %s259_s22 = scalar_lea.vmem %s917_s1, %s830_s29  ;;  %v560_v49 = vand.u32 127, %v559_v48  ;;  %vm564_vm4 = vcmask 64512  }
   0xe   : > { %690 = vmatpush3.bf16.msra.mxu1 %v740_v2  ;;  %705 = vmatprep.mubr.msk.bf16.mxu1 %vm769_vm0, %v768_v1  ;;  %v265_v5 = vld [vmem:[%s255_s10] sm:$0xff]  ;;  %v748_v12 = vld [vmem:[%s920_s4 + $0x38] sm:$0xff]   ;;  %v749_v13 = vld [vmem:[%s920_s4 + $0x30] sm:$0xff]   ;;  %s263_s30 = scalar_lea.vmem %s922_s6, %s830_s29 }
   0xf   : > { %691 = vmatprep.subr.bf16.mxu1 %v768_v1  ;;  %709 = vmatprep.subr.bf16.mxu0 %v768_v1  ;;  %v266_v6 = vpack.c.bf16 %v265_v5, %v265_v5  ;;  %v750_v14 = vld [vmem:[%s920_s4 + $0x28] sm:$0xff]   ;;  %v639_v15 = vld [vmem:[%s921_s5] ss:$0 sm:$0xff]  ;;  %v752_v24 = vld [vmem:[%s920_s4 + $0x18] sm:$0xff]   ;;  %vm561_vm3 = vcmp.eq.s32.totalorder %v560_v49, 5 }
  0x10   : > { %v751_v23 = vld [vmem:[%s920_s4 + $0x20] sm:$0xff]   ;;  %v753_v25 = vld [vmem:[%s920_s4 + $0x10] sm:$0xff]   ;;  %v754_v26 = vld [vmem:[%s920_s4 + $0x8] sm:$0xff]  }
  0x11   : > { %686 = vmatmul.mubr.msk.bf16.vlgmr.msra.gmra.mxu0 %vm283_vm1, %v266_v6  ;;  %v755_v27 = vld [vmem:[%s920_s4] sm:$0xff]  }
  0x12   : > { %692 = vmatpush3.bf16.msra.mxu1 %v741_v3  ;;  %725 = vmatprep.mubr.msk.bf16.mxu0 %vm769_vm0, %v768_v1  ;;  %v642_v28 = vld [vmem:[%s921_s5 + $0x1] ss:$0 sm:$0xff]  ;;  %v651_v36 = vld [vmem:[%s921_s5 + $0x2] ss:$0 sm:$0xff]  ;;  %v660_v43 = vld [vmem:[%s921_s5 + $0x3] ss:$0 sm:$0xff] }
  0x13   : > { %693 = vmatprep.subr.bf16.mxu1 %v768_v1  ;;  %710 = vmatpush3.bf16.msra.mxu0 %v748_v12  ;;  %v547_v38 = vld [vmem:[%s259_s22] sm:$0xff] }
  0x14   : > { %711 = vmatprep.subr.bf16.mxu0 %v768_v1 }
  0x16   : > { %694 = vmatpush3.bf16.msra.mxu1 %v742_v4 }
  0x17   : > { %695 = vmatprep.subr.bf16.mxu1 %v768_v1  ;;  %712 = vmatpush3.bf16.msra.mxu0 %v749_v13 }
  0x18   : > { %713 = vmatprep.subr.bf16.mxu0 %v768_v1 }
  0x1a   : > { %696 = vmatpush3.bf16.msra.mxu1 %v743_v7 }
  0x1b   : > { %697 = vmatprep.subr.bf16.mxu1 %v768_v1  ;;  %714 = vmatpush3.bf16.msra.mxu0 %v750_v14 }
  0x1c   : > { %715 = vmatprep.subr.bf16.mxu0 %v768_v1 }
  0x1e   : > { %698 = vmatpush3.bf16.msra.mxu1 %v744_v8 }
  0x1f   : > { %699 = vmatprep.subr.bf16.mxu1 %v768_v1  ;;  %716 = vmatpush3.bf16.msra.mxu0 %v751_v23 }
  0x20   : > { %717 = vmatprep.subr.bf16.mxu0 %v768_v1 }
  0x22   : > { %700 = vmatpush3.bf16.msra.mxu1 %v745_v9 }
  0x23   : > { %701 = vmatprep.subr.bf16.mxu1 %v768_v1  ;;  %718 = vmatpush3.bf16.msra.mxu0 %v752_v24 }
  0x24   : > { %719 = vmatprep.subr.bf16.mxu0 %v768_v1 }
  0x26   : > { %702 = vmatpush3.bf16.msra.mxu1 %v746_v10 }
  0x27   : > { %703 = vmatprep.subr.bf16.mxu1 %v768_v1  ;;  %720 = vmatpush3.bf16.msra.mxu0 %v753_v25 }
  0x28   : > { %721 = vmatprep.subr.bf16.mxu0 %v768_v1 }
  0x2a   : > { %704 = vmatpush3.bf16.msra.mxu1 %v747_v11 }
  0x2b   : > { %722 = vmatpush3.bf16.msra.mxu0 %v754_v26 }
  0x2c   : > { %723 = vmatprep.subr.bf16.mxu0 %v768_v1 }
  0x2f   : > { %724 = vmatpush3.bf16.msra.mxu0 %v755_v27 }
  0xd1   : > { %v321_v16 = vpop.f32.mrf.mxu0 }
  0xd2   : > { %v322_v17 = vadd.f32 %v639_v15, %v321_v16 }
  0xd3   : > { %v687_v18 = vpop.f32.mrf.mxu0 }
  0xd4   : > { %v327_v19 = vpack.c.bf16 %v322_v17, %v322_v17 }
  0xd5   : > { %v324_v20 = vpop.f32.mrf.mxu0 }
  0xd6   : > { %756 = vtanh.bf16 %v327_v19 }
  0xd7   : > { %v688_v21 = vpop.f32.mrf.mxu0 }
  0xe4   : > { %v757_v22 = vpop.eup %756 }
  0xe5   : > { %706 = vmatmul.mubr.bf16.vlgmr.msra.gmra.mxu1 %v757_v22 }
 0x1a5   : > { %v431_v29 = vpop.f32.mrf.mxu1 }
 0x1a6   : > { %v432_v30 = vadd.f32 %v642_v28, %v431_v29 }
 0x1a7   : > { %v707_v31 = vpop.f32.mrf.mxu1 }
 0x1a8   : > { %v437_v32 = vpack.c.bf16 %v432_v30, %v432_v30 }
 0x1a9   : > { %v434_v33 = vpop.f32.mrf.mxu1 }
 0x1aa   : > { %758 = vtanh.bf16 %v437_v32 }
 0x1ab   : > { %v708_v34 = vpop.f32.mrf.mxu1 }
 0x1b8   : > { %v759_v35 = vpop.eup %758 }
 0x1b9   : > { %726 = vmatmul.mubr.bf16.vlgmr.msra.gmra.mxu0 %v759_v35 }
 0x279   : > { %v541_v37 = vpop.f32.mrf.mxu0 }
 0x27a   : > { %v542_v39 = vadd.f32 %v651_v36, %v541_v37 }
 0x27b   : > { %v727_v40 = vpop.f32.mrf.mxu0 }
 0x27c   : > { %v548_v41 = vsub.f32 %v547_v38, %v542_v39 }
 0x27d   : > { %v544_v42 = vpop.f32.mrf.mxu0 }
 0x27e   : > { %v549_v44 = vmul.f32 %v548_v41, %v548_v41 }
 0x27f   : > { %v728_v45 = vpop.f32.mrf.mxu0 }
 0x280   : > { %v554_v46 = vmul.f32 %v660_v43, %v549_v44 }
 0x282   : > { %v556_v47 = vsel %vm555_vm2, %v554_v46, 0.0 }
 0x283   : > { %557 = vadd.xlane.f32.xlu0 %v556_v47 }
 0x30c   : > { %v558_v50 = vpop.xlane.xlu0 %557 }
 0x30d   : > { %v562_v51 = vmul.f32 -0.5, %v558_v50 }
 0x30f   : > { %v563_v52 = vsel %vm561_vm3, %v562_v51, %v542_v39 }
 0x310   : > { %565 = vst.msk [vmem:[%s263_s30] sm:$0xff] %vm564_vm4, %v563_v52 }
 0x311 PF: > { %s16_s21 = sadd.s32 1, %s766_s21  }
 0x312   : > { %p13_p4 = scmp.ge.s32.totalorder %s16_s21, 7  }
 0x314   :  { %15 = sbr.rel (!%p13_p4) target bundleno = 1 (0x1), region = 77 }

// kernel: evaluate.1
= control target key start
LH: loop header
LB: loop body
LE: loop exit
PB: predicated region body
PF: predicated region fallthrough
CT: control target
= control target key end

     0   :  { %s805_s21 = smov 0   ;;  %s916_s0 = inlined_call_operand.vmem [shape: f32[37,16], index: 0, kind: input, shape index: {}]   ;;  %s917_s1 = inlined_call_operand.vmem [shape: f32[37,4], index: 1, kind: input, shape index: {}]   ;;  %s918_s2 = inlined_call_operand.vmem [shape: bf16[16,128], index: 2, kind: input, shape index: {}]   ;;  %s919_s3 = inlined_call_operand.vmem [shape: bf16[128,128], index: 3, kind: input, shape index: {}]   ;;  %s920_s4 = inlined_call_operand.vmem [shape: bf16[128,8], index: 4, kind: input, shape index: {}]   ;;  %s921_s5 = inlined_call_operand.vmem [shape: f32[8,128], index: 5, kind: input, shape index: {}]   ;;  %s922_s6 = inlined_call_operand.vmem [shape: f32[37,8], index: 6, kind: output, shape index: {}]  }
   0x1 LB: > { %s631_s22 = sadd.s32 4294967295, %s766_s21   ;;  %p635_p0 = scmp.ge.s32.totalorder %s766_s21, 1  ;;  %s766_s21 = sphi %s805_s21, %s16_s21  }
   0x2   : > { %p220_p1 = scmp.lt.s32.totalorder %s766_s21, 6 }
   0x4   : > { %p221_p2 = pnand %p635_p0, %p220_p1 }
   0x5   : > { %p252_p3 = scmp.lt.s32.totalorder (!%p221_p2), %s631_s22, 4 }
   0x6   : > { %224 = sbr.rel (%p221_p2) target bundleno = 783 (0x30f), region = 44 }
   0xb   : > { %v739_v0 = vld [vmem:[%s918_s2] sm:$0xff]   ;;  %v768_v1 = vmov 0.0   ;;  %v740_v2 = vld [vmem:[%s919_s3 + $0x38] sm:$0xff]   ;;  %vm769_vm0 = vmmov 0   ;;  %s924_s22 = smov (!%p252_p3, %s631_s22), 4  ;;  %v741_v3 = vld [vmem:[%s919_s3 + $0x30] sm:$0xff]   ;;  %v559_v48 = vlaneseq }
   0xc   : > { %683 = vmatprep.subr.bf16.mxu0 %v768_v1  ;;  %689 = vmatprep.subr.bf16.mxu1 %v768_v1  ;;  %s830_s29 = sshll.u32 %s924_s22, 3  ;;  %v742_v4 = vld [vmem:[%s919_s3 + $0x28] sm:$0xff]   ;;  %vm283_vm1 = vcmask 130048   ;;  %v743_v7 = vld [vmem:[%s919_s3 + $0x20] sm:$0xff]   ;;  %v744_v8 = vld [vmem:[%s919_s3 + $0x18] sm:$0xff]   ;;  %vm555_vm2 = vcmask 31744  }
   0xd   : > { %684 = vmatpush3.bf16.msra.mxu0 %v739_v0  ;;  %685 = vmatprep.mubr.msk.bf16.mxu0 %vm769_vm0, %v768_v1  ;;  %s255_s10 = scalar_lea.vmem %s916_s0, %s830_s29  ;;  %v745_v9 = vld [vmem:[%s919_s3 + $0x10] sm:$0xff]   ;;  %v746_v10 = vld [vmem:[%s919_s3 + $0x8] sm:$0xff]   ;;  %v747_v11 = vld [vmem:[%s919_s3] sm:$0xff]   ;;  %s259_s22 = scalar_lea.vmem %s917_s1, %s830_s29  ;;  %v560_v49 = vand.u32 127, %v559_v48  ;;  %vm564_vm4 = vcmask 64512  }
   0xe   : > { %690 = vmatpush3.bf16.msra.mxu1 %v740_v2  ;;  %705 = vmatprep.mubr.msk.bf16.mxu1 %vm769_vm0, %v768_v1  ;;  %v265_v5 = vld [vmem:[%s255_s10] sm:$0xff]  ;;  %v748_v12 = vld [vmem:[%s920_s4 + $0x38] sm:$0xff]   ;;  %v749_v13 = vld [vmem:[%s920_s4 + $0x30] sm:$0xff]   ;;  %s263_s30 = scalar_lea.vmem %s922_s6, %s830_s29 }
   0xf   : > { %691 = vmatprep.subr.bf16.mxu1 %v768_v1  ;;  %709 = vmatprep.subr.bf16.mxu0 %v768_v1  ;;  %v266_v6 = vpack.c.bf16 %v265_v5, %v265_v5  ;;  %v750_v14 = vld [vmem:[%s920_s4 + $0x28] sm:$0xff]   ;;  %v639_v15 = vld [vmem:[%s921_s5] ss:$0 sm:$0xff]  ;;  %v752_v24 = vld [vmem:[%s920_s4 + $0x18] sm:$0xff]   ;;  %vm561_vm3 = vcmp.eq.s32.totalorder %v560_v49, 5 }
  0x10   : > { %v751_v23 = vld [vmem:[%s920_s4 + $0x20] sm:$0xff]   ;;  %v753_v25 = vld [vmem:[%s920_s4 + $0x10] sm:$0xff]   ;;  %v754_v26 = vld [vmem:[%s920_s4 + $0x8] sm:$0xff]  }
  0x11   : > { %686 = vmatmul.mubr.msk.bf16.vlgmr.msra.gmra.mxu0 %vm283_vm1, %v266_v6  ;;  %v755_v27 = vld [vmem:[%s920_s4] sm:$0xff]  }
  0x12   : > { %692 = vmatpush3.bf16.msra.mxu1 %v741_v3  ;;  %725 = vmatprep.mubr.msk.bf16.mxu0 %vm769_vm0, %v768_v1  ;;  %v642_v28 = vld [vmem:[%s921_s5 + $0x1] ss:$0 sm:$0xff]  ;;  %v651_v36 = vld [vmem:[%s921_s5 + $0x2] ss:$0 sm:$0xff]  ;;  %v660_v43 = vld [vmem:[%s921_s5 + $0x3] ss:$0 sm:$0xff] }
  0x13   : > { %693 = vmatprep.subr.bf16.mxu1 %v768_v1  ;;  %710 = vmatpush3.bf16.msra.mxu0 %v748_v12  ;;  %v547_v38 = vld [vmem:[%s259_s22] sm:$0xff] }
  0x14   : > { %711 = vmatprep.subr.bf16.mxu0 %v768_v1 }
  0x16   : > { %694 = vmatpush3.bf16.msra.mxu1 %v742_v4 }
  0x17   : > { %695 = vmatprep.subr.bf16.mxu1 %v768_v1  ;;  %712 = vmatpush3.bf16.msra.mxu0 %v749_v13 }
  0x18   : > { %713 = vmatprep.subr.bf16.mxu0 %v768_v1 }
  0x1a   : > { %696 = vmatpush3.bf16.msra.mxu1 %v743_v7 }
  0x1b   : > { %697 = vmatprep.subr.bf16.mxu1 %v768_v1  ;;  %714 = vmatpush3.bf16.msra.mxu0 %v750_v14 }
  0x1c   : > { %715 = vmatprep.subr.bf16.mxu0 %v768_v1 }
  0x1e   : > { %698 = vmatpush3.bf16.msra.mxu1 %v744_v8 }
  0x1f   : > { %699 = vmatprep.subr.bf16.mxu1 %v768_v1  ;;  %716 = vmatpush3.bf16.msra.mxu0 %v751_v23 }
  0x20   : > { %717 = vmatprep.subr.bf16.mxu0 %v768_v1 }
  0x22   : > { %700 = vmatpush3.bf16.msra.mxu1 %v745_v9 }
  0x23   : > { %701 = vmatprep.subr.bf16.mxu1 %v768_v1  ;;  %718 = vmatpush3.bf16.msra.mxu0 %v752_v24 }
  0x24   : > { %719 = vmatprep.subr.bf16.mxu0 %v768_v1 }
  0x26   : > { %702 = vmatpush3.bf16.msra.mxu1 %v746_v10 }
  0x27   : > { %703 = vmatprep.subr.bf16.mxu1 %v768_v1  ;;  %720 = vmatpush3.bf16.msra.mxu0 %v753_v25 }
  0x28   : > { %721 = vmatprep.subr.bf16.mxu0 %v768_v1 }
  0x2a   : > { %704 = vmatpush3.bf16.msra.mxu1 %v747_v11 }
  0x2b   : > { %722 = vmatpush3.bf16.msra.mxu0 %v754_v26 }
  0x2c   : > { %723 = vmatprep.subr.bf16.mxu0 %v768_v1 }
  0x2f   : > { %724 = vmatpush3.bf16.msra.mxu0 %v755_v27 }
  0xd1   : > { %v321_v16 = vpop.f32.mrf.mxu0 }
  0xd2   : > { %v322_v17 = vadd.f32 %v639_v15, %v321_v16 }
  0xd3   : > { %v687_v18 = vpop.f32.mrf.mxu0 }
  0xd4   : > { %756 = vtanh.f32 %v322_v17 }
  0xd5   : > { %v324_v19 = vpop.f32.mrf.mxu0 }
  0xd7   : > { %v688_v20 = vpop.f32.mrf.mxu0 }
  0xe1   : > { %v757_v21 = vpop.eup %756 }
  0xe2   : > { %v328_v22 = vpack.c.bf16 %v757_v21, %v757_v21 }
  0xe4   : > { %706 = vmatmul.mubr.bf16.vlgmr.msra.gmra.mxu1 %v328_v22 }
 0x1a4   : > { %v431_v29 = vpop.f32.mrf.mxu1 }
 0x1a5   : > { %v432_v30 = vadd.f32 %v642_v28, %v431_v29 }
 0x1a6   : > { %v707_v31 = vpop.f32.mrf.mxu1 }
 0x1a7   : > { %758 = vtanh.f32 %v432_v30 }
 0x1a8   : > { %v434_v32 = vpop.f32.mrf.mxu1 }
 0x1aa   : > { %v708_v33 = vpop.f32.mrf.mxu1 }
 0x1b4   : > { %v759_v34 = vpop.eup %758 }
 0x1b5   : > { %v438_v35 = vpack.c.bf16 %v759_v34, %v759_v34 }
 0x1b7   : > { %726 = vmatmul.mubr.bf16.vlgmr.msra.gmra.mxu0 %v438_v35 }
 0x277   : > { %v541_v37 = vpop.f32.mrf.mxu0 }
 0x278   : > { %v542_v39 = vadd.f32 %v651_v36, %v541_v37 }
 0x279   : > { %v727_v40 = vpop.f32.mrf.mxu0 }
 0x27a   : > { %v548_v41 = vsub.f32 %v547_v38, %v542_v39 }
 0x27b   : > { %v544_v42 = vpop.f32.mrf.mxu0 }
 0x27c   : > { %v549_v44 = vmul.f32 %v548_v41, %v548_v41 }
 0x27d   : > { %v728_v45 = vpop.f32.mrf.mxu0 }
 0x27e   : > { %v554_v46 = vmul.f32 %v660_v43, %v549_v44 }
 0x280   : > { %v556_v47 = vsel %vm555_vm2, %v554_v46, 0.0 }
 0x281   : > { %557 = vadd.xlane.f32.xlu0 %v556_v47 }
 0x30a   : > { %v558_v50 = vpop.xlane.xlu0 %557 }
 0x30b   : > { %v562_v51 = vmul.f32 -0.5, %v558_v50 }
 0x30d   : > { %v563_v52 = vsel %vm561_vm3, %v562_v51, %v542_v39 }
 0x30e   : > { %565 = vst.msk [vmem:[%s263_s30] sm:$0xff] %vm564_vm4, %v563_v52 }
 0x30f PF: > { %s16_s21 = sadd.s32 1, %s766_s21  }
 0x310   : > { %p13_p4 = scmp.ge.s32.totalorder %s16_s21, 7  }
 0x312   :  { %15 = sbr.rel (!%p13_p4) target bundleno = 1 (0x1), region = 77 }

</bundles_post_ra>
